<compile_context>
chip_gen: v7x
topology: tpu7x:2x2x1
jax: 0.10.0
libtpu: 0.0.40
codegen_flags: <defaults>
</compile_context>

<pallas_src>
import math
import functools

import jax
import jax.numpy as jnp
from jax.experimental import pallas as pl
from jax.experimental.pallas import tpu as pltpu


# ----------------------------------------------------------------------------
# Pallas kernels
# ----------------------------------------------------------------------------
def _im2col_patches(x_flat_f32, h, wp):
    """Build the (h*wp, 9*Cin) im2col block from the flat padded image.

    x_flat_f32: (Hp*Wp + 2, Cin) f32 -- reflection-padded image flattened
    row-major with 2 slack rows so every tap slice stays in bounds.
    Tap (dy, dx) is the contiguous row slice [dy*wp+dx : dy*wp+dx + h*wp].
    """
    L = h * wp
    taps = [x_flat_f32[dy * wp + dx: dy * wp + dx + L, :]
            for dy in range(3) for dx in range(3)]
    return jnp.concatenate(taps, axis=-1)                     # (L, 9*Cin)


def _elu(x):
    # ELU(alpha=1): x if x > 0 else exp(x) - 1  (clamp arg so the unselected
    # branch cannot overflow)
    return jnp.where(x > 0, x, jnp.exp(jnp.minimum(x, 0.0)) - 1.0)


def _conv3x3_kernel(x_ref, w_ref, b_ref, o_ref, *, h, wp, act):
    # x_ref: (1, Hp*Wp + 2, Cin) bf16   flat reflection-padded image
    # w_ref: (9*Cin, Cout)       bf16
    # b_ref: (1, Cout)           f32
    # o_ref: (1, h*wp, Cout)
    x = x_ref[0].astype(jnp.float32)
    patches = _im2col_patches(x, h, wp).astype(jnp.bfloat16)
    acc = jnp.dot(patches, w_ref[...], preferred_element_type=jnp.float32)
    acc = acc + b_ref[...]
    if act == "elu":
        acc = _elu(acc)
    elif act == "sigmoid":
        acc = 1.0 / (1.0 + jnp.exp(-acc))
    o_ref[0] = acc.astype(o_ref.dtype)


def _convblock_deconv_kernel(x_ref, cw_ref, cb_ref, dw_ref, db_ref, o_ref, *, h, wp):
    # Fused: ReflectionPad2d(1)+Conv2d(3x3)+ELU followed by
    # ConvTranspose2d(k=2, s=2) expressed as one (Cmid, 4*Cout) matmul.
    # x_ref : (1, Hp*Wp + 2, Cin) bf16
    # cw_ref: (9*Cin, Cmid) bf16     cb_ref: (1, Cmid) f32
    # dw_ref: (Cmid, 4*Cout) bf16    db_ref: (1, 4*Cout) f32
    # o_ref : (1, h*wp, 4*Cout)
    x = x_ref[0].astype(jnp.float32)
    patches = _im2col_patches(x, h, wp).astype(jnp.bfloat16)
    acc = jnp.dot(patches, cw_ref[...], preferred_element_type=jnp.float32)
    acc = _elu(acc + cb_ref[...])
    y = jnp.dot(acc.astype(jnp.bfloat16), dw_ref[...],
                preferred_element_type=jnp.float32)
    y = y + db_ref[...]
    o_ref[0] = y.astype(o_ref.dtype)


# ----------------------------------------------------------------------------
# Wrappers (JAX glue: padding, flattening, sub-pixel interleave, skip concat)
# ----------------------------------------------------------------------------
def _flat_padded(x):
    """(N,H,W,C) -> reflection pad 1 -> flatten rows -> (N, Hp*Wp + 2, C)."""
    n, h, w, c = x.shape
    xp = jnp.pad(x, ((0, 0), (1, 1), (1, 1), (0, 0)), mode="reflect")
    xf = xp.reshape(n, (h + 2) * (w + 2), c)
    return jnp.pad(xf, ((0, 0), (0, 2), (0, 0)))   # 2 slack rows for last taps


def _conv_w(w, b):
    # w: (3,3,Cin,Cout) -> (9*Cin, Cout) bf16 ; b -> (1, Cout) f32
    kh, kw, cin, cout = w.shape
    return (w.reshape(kh * kw * cin, cout).astype(jnp.bfloat16),
            b.reshape(1, cout).astype(jnp.float32))


def _deconv_w(w, b):
    # torch ConvTranspose2d layout (Cin, Cout, 2, 2) -> (Cin, 4*Cout), col = (a*2+b)*Cout+co
    cin, cout = w.shape[0], w.shape[1]
    wf = jnp.transpose(w, (0, 2, 3, 1)).reshape(cin, 4 * cout).astype(jnp.bfloat16)
    bf = jnp.tile(b, 4).reshape(1, 4 * cout).astype(jnp.float32)
    return wf, bf


def conv3x3_act(x, w, b, act, out_dtype):
    """ReflectionPad2d(1) + Conv2d(3x3) + activation.  x: (N,H,W,Cin) NHWC."""
    n, h, wim, cin = x.shape
    cout = w.shape[-1]
    wp = wim + 2
    L = h * wp
    xf = _flat_padded(x)
    rows = xf.shape[1]
    wf, bf = _conv_w(w, b)

    kernel = functools.partial(_conv3x3_kernel, h=h, wp=wp, act=act)
    out = pl.pallas_call(
        kernel,
        out_shape=jax.ShapeDtypeStruct((n, L, cout), out_dtype),
        grid=(n,),
        in_specs=[
            pl.BlockSpec((1, rows, cin), lambda i: (i, 0, 0)),
            pl.BlockSpec((9 * cin, cout), lambda i: (0, 0)),
            pl.BlockSpec((1, cout), lambda i: (0, 0)),
        ],
        out_specs=pl.BlockSpec((1, L, cout), lambda i: (i, 0, 0)),
        compiler_params=pltpu.CompilerParams(dimension_semantics=("parallel",)),
    )(xf, wf, bf)
    # Drop the Wp-W wrap-around columns produced by the flat-row trick.
    return out.reshape(n, h, wp, cout)[:, :, :wim, :]


def convblock_deconv(x, cw, cb, dw, db, out_dtype=jnp.bfloat16):
    """Fused ConvBlock (3x3 conv + ELU) + ConvTranspose2d(2, stride=2)."""
    n, h, wim, cin = x.shape
    cmid = cw.shape[-1]
    cout = dw.shape[1]
    wp = wim + 2
    L = h * wp
    xf = _flat_padded(x)
    rows = xf.shape[1]
    cwf, cbf = _conv_w(cw, cb)
    dwf, dbf = _deconv_w(dw, db)

    kernel = functools.partial(_convblock_deconv_kernel, h=h, wp=wp)
    y = pl.pallas_call(
        kernel,
        out_shape=jax.ShapeDtypeStruct((n, L, 4 * cout), out_dtype),
        grid=(n,),
        in_specs=[
            pl.BlockSpec((1, rows, cin), lambda i: (i, 0, 0)),
            pl.BlockSpec((9 * cin, cmid), lambda i: (0, 0)),
            pl.BlockSpec((1, cmid), lambda i: (0, 0)),
            pl.BlockSpec((cmid, 4 * cout), lambda i: (0, 0)),
            pl.BlockSpec((1, 4 * cout), lambda i: (0, 0)),
        ],
        out_specs=pl.BlockSpec((1, L, 4 * cout), lambda i: (i, 0, 0)),
        compiler_params=pltpu.CompilerParams(dimension_semantics=("parallel",)),
    )(xf, cwf, cbf, dwf, dbf)

    # Sub-pixel interleave: y[n, i*wp+j, (a*2+b)*cout+co] -> out[n, 2i+a, 2j+b, co]
    y = y.reshape(n, h, wp, 2, 2, cout)[:, :, :wim]
    y = jnp.transpose(y, (0, 1, 3, 2, 4, 5)).reshape(n, 2 * h, 2 * wim, cout)
    return y


# ----------------------------------------------------------------------------
# ResNetDecoder forward (NCHW in / NCHW out, matching the PyTorch module)
# ----------------------------------------------------------------------------
def resnet_decoder_forward(params, input_features_nchw, num_ch_dec, use_skips=True):
    num_block = len(num_ch_dec) - 1
    feats = [jnp.transpose(f, (0, 2, 3, 1)).astype(jnp.bfloat16)
             for f in input_features_nchw]                       # -> NHWC bf16

    x = feats[-1]
    for i in range(num_block, -1, -1):
        cw, cb = params[("upconv", i, 0)]
        dw, db = params[("upsample", i)]
        x = convblock_deconv(x, cw, cb, dw, db, out_dtype=jnp.bfloat16)
        if use_skips:
            x = jnp.concatenate([x, feats[i]], axis=-1)          # == torch cat dim 1
        w, b = params[("upconv", i, 1)]
        x = conv3x3_act(x, w, b, act="elu", out_dtype=jnp.bfloat16)

    w, b = params[("tail",)]
    x = conv3x3_act(x, w, b, act="sigmoid", out_dtype=jnp.float32)
    return jnp.transpose(x, (0, 3, 1, 2))                        # back to NCHW


# ----------------------------------------------------------------------------
# Deterministic parameter initialization (synthetic; shapes per module __init__)
# NOTE for porting real PyTorch weights: Conv2d weights are (Cout,Cin,3,3) and
# would need a (2,3,1,0) permute into the (3,3,Cin,Cout) layout used here.
# ----------------------------------------------------------------------------
def _uniform(key, shape, bound):
    return jax.random.uniform(key, shape, jnp.float32, -bound, bound)


def init_params(key, num_ch_enc, num_ch_dec, num_output_channels=1, use_skips=True):
    num_block = len(num_ch_dec) - 1
    params = {}
    for i in range(num_block, -1, -1):
        ch_in = num_ch_enc[-1] if i == num_block else num_ch_dec[i + 1]
        ch_out = num_ch_dec[i]
        key, k1, k2, k3, k4, k5, k6 = jax.random.split(key, 7)

        bnd = 1.0 / math.sqrt(ch_in * 9)
        params[("upconv", i, 0)] = (_uniform(k1, (3, 3, ch_in, ch_out), bnd),
                                    _uniform(k2, (ch_out,), bnd))

        bnd = 1.0 / math.sqrt(ch_out * 4)
        params[("upsample", i)] = (_uniform(k3, (ch_out, ch_out, 2, 2), bnd),  # torch (Cin,Cout,2,2)
                                   _uniform(k4, (ch_out,), bnd))

        ch_in2 = ch_out + (num_ch_enc[i] if use_skips else 0)
        bnd = 1.0 / math.sqrt(ch_in2 * 9)
        params[("upconv", i, 1)] = (_uniform(k5, (3, 3, ch_in2, ch_out), bnd),
                                    _uniform(k6, (ch_out,), bnd))

    key, k1, k2 = jax.random.split(key, 3)
    bnd = 1.0 / math.sqrt(num_ch_dec[0] * 9)
    params[("tail",)] = (_uniform(k1, (3, 3, num_ch_dec[0], num_output_channels), bnd),
                         _uniform(k2, (num_output_channels,), bnd))
    return params


# ----------------------------------------------------------------------------
if __name__ == "__main__":
    key = jax.random.PRNGKey(0)

    num_ch_enc = [4, 8, 16, 32]
    num_ch_dec = [4, 8, 16]
    batch = 2
    base = 4  # innermost spatial resolution

    # Encoder feature pyramid (NCHW, like the PyTorch module expects):
    #   f0: (2,4,32,32)  f1: (2,8,16,16)  f2: (2,16,8,8)  f3: (2,32,4,4)
    n_feats = len(num_ch_enc)
    keys = jax.random.split(key, n_feats + 1)
    input_features = []
    for i, c in enumerate(num_ch_enc):
        s = base * (2 ** (n_feats - 1 - i))
        input_features.append(
            jax.random.normal(keys[i], (batch, c, s, s), jnp.float32))

    params = init_params(keys[-1], num_ch_enc, num_ch_dec, num_output_channels=1)

    out = resnet_decoder_forward(params, input_features, num_ch_dec, use_skips=True)
    out = jax.block_until_ready(out)

    expected = (batch, 1, base * (2 ** n_feats) // 2, base * (2 ** n_feats) // 2)  # (2,1,32,32)
    assert out.shape == expected, (out.shape, expected)
    assert bool(jnp.all(jnp.isfinite(out)))
    assert bool(jnp.all((out >= 0.0) & (out <= 1.0)))  # sigmoid output range

    print("KERNEL_OK")
</pallas_src>

<mosaic_0001>
module attributes {stable_mosaic.version = 11 : i64} {
  func.func @_convblock_deconv_kernel(%arg0: i32, %arg1: memref<1x38x32xbf16, #tpu.memory_space<vmem>>, %arg2: memref<288x16xbf16, #tpu.memory_space<vmem>>, %arg3: memref<1x16xf32, #tpu.memory_space<vmem>>, %arg4: memref<16x64xbf16, #tpu.memory_space<vmem>>, %arg5: memref<1x64xf32, #tpu.memory_space<vmem>>, %arg6: memref<1x24x64xbf16, #tpu.memory_space<vmem>>) attributes {dimension_semantics = [#tpu.dimension_semantics<parallel>], iteration_bounds = array<i64: 2>, scalar_prefetch = 0 : i64, scratch_operands = 0 : i64, tpu.core_type = #tpu.core_type<tc>, window_params = [{transform_indices = @transform_0, window_bounds = array<i64: 1, 38, 32>}, {pipeline_mode = #tpu.pipeline_mode<synchronous>, transform_indices = @transform_1, window_bounds = array<i64: 288, 16>}, {pipeline_mode = #tpu.pipeline_mode<synchronous>, transform_indices = @transform_2, window_bounds = array<i64: 1, 16>}, {pipeline_mode = #tpu.pipeline_mode<synchronous>, transform_indices = @transform_3, window_bounds = array<i64: 16, 64>}, {pipeline_mode = #tpu.pipeline_mode<synchronous>, transform_indices = @transform_4, window_bounds = array<i64: 1, 64>}, {transform_indices = @transform_5, window_bounds = array<i64: 1, 24, 64>}]} {
    %c0 = arith.constant 0 : index
    %c0_0 = arith.constant 0 : index
    %c0_1 = arith.constant 0 : index
    %0 = vector.load %arg1[%c0, %c0_0, %c0_1] : memref<1x38x32xbf16, #tpu.memory_space<vmem>>, vector<1x38x32xbf16>
    %1 = vector.shape_cast %0 : vector<1x38x32xbf16> to vector<38x32xbf16>
    %2 = arith.extf %1 : vector<38x32xbf16> to vector<38x32xf32>
    %3 = vector.extract_strided_slice %2 {offsets = [0, 0], sizes = [24, 32], strides = [1, 1]} : vector<38x32xf32> to vector<24x32xf32>
    %4 = vector.extract_strided_slice %2 {offsets = [1, 0], sizes = [24, 32], strides = [1, 1]} : vector<38x32xf32> to vector<24x32xf32>
    %5 = vector.extract_strided_slice %2 {offsets = [2, 0], sizes = [24, 32], strides = [1, 1]} : vector<38x32xf32> to vector<24x32xf32>
    %6 = vector.extract_strided_slice %2 {offsets = [6, 0], sizes = [24, 32], strides = [1, 1]} : vector<38x32xf32> to vector<24x32xf32>
    %7 = vector.extract_strided_slice %2 {offsets = [7, 0], sizes = [24, 32], strides = [1, 1]} : vector<38x32xf32> to vector<24x32xf32>
    %8 = vector.extract_strided_slice %2 {offsets = [8, 0], sizes = [24, 32], strides = [1, 1]} : vector<38x32xf32> to vector<24x32xf32>
    %9 = vector.extract_strided_slice %2 {offsets = [12, 0], sizes = [24, 32], strides = [1, 1]} : vector<38x32xf32> to vector<24x32xf32>
    %10 = vector.extract_strided_slice %2 {offsets = [13, 0], sizes = [24, 32], strides = [1, 1]} : vector<38x32xf32> to vector<24x32xf32>
    %11 = vector.extract_strided_slice %2 {offsets = [14, 0], sizes = [24, 32], strides = [1, 1]} : vector<38x32xf32> to vector<24x32xf32>
    %12 = tpu.concatenate %3, %4, %5, %6, %7, %8, %9, %10, %11 in 1 : vector<24x32xf32>, vector<24x32xf32>, vector<24x32xf32>, vector<24x32xf32>, vector<24x32xf32>, vector<24x32xf32>, vector<24x32xf32>, vector<24x32xf32>, vector<24x32xf32> -> vector<24x288xf32>
    %13 = arith.truncf %12 : vector<24x288xf32> to vector<24x288xbf16>
    %c0_2 = arith.constant 0 : index
    %c0_3 = arith.constant 0 : index
    %14 = vector.load %arg2[%c0_2, %c0_3] : memref<288x16xbf16, #tpu.memory_space<vmem>>, vector<288x16xbf16>
    %cst = arith.constant dense<0.000000e+00> : vector<24x16xf32>
    %15 = tpu.matmul %13, %14, %cst {dimension_numbers = #tpu.dot_dimension_numbers<[1], [0], [0], [1], [0, 0, 1, 1], [], []>} : vector<24x288xbf16>, vector<288x16xbf16>, vector<24x16xf32> -> vector<24x16xf32>
    %c0_4 = arith.constant 0 : index
    %c0_5 = arith.constant 0 : index
    %16 = vector.load %arg3[%c0_4, %c0_5] : memref<1x16xf32, #tpu.memory_space<vmem>>, vector<1x16xf32>
    %17 = vector.broadcast %16 : vector<1x16xf32> to vector<24x16xf32>
    %18 = arith.addf %15, %17 : vector<24x16xf32>
    %cst_6 = arith.constant 0.000000e+00 : f32
    %19 = vector.broadcast %cst_6 : f32 to vector<24x16xf32>
    %20 = arith.cmpf ogt, %18, %19 : vector<24x16xf32>
    %cst_7 = arith.constant 0.000000e+00 : f32
    %21 = vector.broadcast %cst_7 : f32 to vector<24x16xf32>
    %22 = arith.minimumf %18, %21 : vector<24x16xf32>
    %23 = math.exp %22 : vector<24x16xf32>
    %cst_8 = arith.constant 1.000000e+00 : f32
    %24 = vector.broadcast %cst_8 : f32 to vector<24x16xf32>
    %25 = arith.subf %23, %24 : vector<24x16xf32>
    %26 = arith.select %20, %18, %25 : vector<24x16xi1>, vector<24x16xf32>
    %27 = arith.truncf %26 : vector<24x16xf32> to vector<24x16xbf16>
    %c0_9 = arith.constant 0 : index
    %c0_10 = arith.constant 0 : index
    %28 = vector.load %arg4[%c0_9, %c0_10] : memref<16x64xbf16, #tpu.memory_space<vmem>>, vector<16x64xbf16>
    %cst_11 = arith.constant dense<0.000000e+00> : vector<24x64xf32>
    %29 = tpu.matmul %27, %28, %cst_11 {dimension_numbers = #tpu.dot_dimension_numbers<[1], [0], [0], [1], [0, 0, 1, 1], [], []>} : vector<24x16xbf16>, vector<16x64xbf16>, vector<24x64xf32> -> vector<24x64xf32>
    %c0_12 = arith.constant 0 : index
    %c0_13 = arith.constant 0 : index
    %30 = vector.load %arg5[%c0_12, %c0_13] : memref<1x64xf32, #tpu.memory_space<vmem>>, vector<1x64xf32>
    %31 = vector.broadcast %30 : vector<1x64xf32> to vector<24x64xf32>
    %32 = arith.addf %29, %31 : vector<24x64xf32>
    %33 = arith.truncf %32 : vector<24x64xf32> to vector<24x64xbf16>
    %c0_14 = arith.constant 0 : index
    %c0_15 = arith.constant 0 : index
    %c0_16 = arith.constant 0 : index
    %34 = vector.load %arg6[%c0_14, %c0_15, %c0_16] : memref<1x24x64xbf16, #tpu.memory_space<vmem>>, vector<1x24x64xbf16>
    %35 = vector.shape_cast %34 : vector<1x24x64xbf16> to vector<24x64xbf16>
    %36 = vector.shape_cast %33 : vector<24x64xbf16> to vector<1x24x64xbf16>
    tpu.vector_store %arg6[%c0_14, %c0_15, %c0_16], %36 {strides = array<i32>} : memref<1x24x64xbf16, #tpu.memory_space<vmem>>, vector<1x24x64xbf16>,
    return
  }
  func.func @transform_0(%arg0: i32) -> (i32, i32, i32) {
    %c0_i32 = arith.constant 0 : i32
    %c0_i32_0 = arith.constant 0 : i32
    %c0_i32_1 = arith.constant 0 : i32
    return %arg0, %c0_i32, %c0_i32_0 : i32, i32, i32
  }
  func.func @transform_1(%arg0: i32) -> (i32, i32) {
    %c0_i32 = arith.constant 0 : i32
    %c0_i32_0 = arith.constant 0 : i32
    %c0_i32_1 = arith.constant 0 : i32
    return %c0_i32, %c0_i32_0 : i32, i32
  }
  func.func @transform_2(%arg0: i32) -> (i32, i32) {
    %c0_i32 = arith.constant 0 : i32
    %c0_i32_0 = arith.constant 0 : i32
    %c0_i32_1 = arith.constant 0 : i32
    return %c0_i32, %c0_i32_0 : i32, i32
  }
  func.func @transform_3(%arg0: i32) -> (i32, i32) {
    %c0_i32 = arith.constant 0 : i32
    %c0_i32_0 = arith.constant 0 : i32
    %c0_i32_1 = arith.constant 0 : i32
    return %c0_i32, %c0_i32_0 : i32, i32
  }
  func.func @transform_4(%arg0: i32) -> (i32, i32) {
    %c0_i32 = arith.constant 0 : i32
    %c0_i32_0 = arith.constant 0 : i32
    %c0_i32_1 = arith.constant 0 : i32
    return %c0_i32, %c0_i32_0 : i32, i32
  }
  func.func @transform_5(%arg0: i32) -> (i32, i32, i32) {
    %c0_i32 = arith.constant 0 : i32
    %c0_i32_0 = arith.constant 0 : i32
    %c0_i32_1 = arith.constant 0 : i32
    return %arg0, %c0_i32, %c0_i32_0 : i32, i32, i32
  }
}

</mosaic_0001>

<bundles_post_ra>
// kernel: tpu_custom_call.1
= control target key start
LH: loop header
LB: loop body
LE: loop exit
PB: predicated region body
PF: predicated region fallthrough
CT: control target
= control target key end

     0   :  { %10 = vsyncpa [#allocation3], 0  ;;  %s1384_s0 = inlined_call_operand.vmem [shape: bf16[2,38,32], index: 0, kind: input, shape index: {}]   ;;  %s1385_s1 = inlined_call_operand.vmem [shape: bf16[288,16], index: 1, kind: input, shape index: {}]   ;;  %s1386_s2 = inlined_call_operand.vmem [shape: f32[1,16], index: 2, kind: input, shape index: {}]   ;;  %s1387_s3 = inlined_call_operand.vmem [shape: bf16[16,64], index: 3, kind: input, shape index: {}]   ;;  %s1388_s4 = inlined_call_operand.vmem [shape: f32[1,64], index: 4, kind: input, shape index: {}]   ;;  %s1389_s5 = inlined_call_operand.hbm [shape: bf16[2,24,64], index: 5, kind: output, shape index: {}]  }
   0x1   :  { %12 = vsyncpa [#allocation3 + $0x1], 0  ;;  %s1127_s18 = smov 0   ;;  %s1129_s19 = smov 0  }
   0x2   :  { %s1131_s20 = smov 0   ;;  %s1133_s21 = smov 0  }
   0x3 LB: > { %s1148_s22 = sadd.s32 4294967295, %s1090_s21   ;;  %s812_s23 = sadd.s32 4294967294, %s1090_s21   ;;  %s1090_s21 = sphi %s1133_s21, %s1395_s21   ;;  %s1086_s20 = sphi %s1131_s20, %s1394_s20   ;;  %s1082_s19 = sphi %s1129_s19, %s1393_s19   ;;  %s1078_s18 = sphi %s1127_s18, %s1392_s18  }
   0x4   : > { %s1152_s24 = sadd.s32 1, %s1090_s21   ;;  %s135_s25 = sadd.s32 1, %s1086_s20 }
   0x5   : > { %s132_s26 = ssub.s32 %s1090_s21, %s1152_s24  ;;  %p145_p0 = scmp.ne.s32.totalorder %s1086_s20, %s1082_s19 }
   0x6   : > { %p133_p1 = scmp.eq.s32.totalorder %s132_s26, 0  ;;  %p146_p2 = scmp.eq.s32.totalorder %s1148_s22, 1 }
   0x7   : > { %p151_p3 = scmp.ne.s32.totalorder %s1082_s19, %s1078_s18  ;;  %p152_p4 = scmp.eq.s32.totalorder %s812_s23, 1 }
   0x8   : > { %s1163_s27 = scalar_select %p133_p1, %s1086_s20, %s135_s25  }
   0x9   : > { %p1165_p5 = por %p146_p2, %p145_p0  ;;  %p1169_p6 = por %p152_p4, %p151_p3 }
   0xa   : > { %p815_p7 = scmp.ge.s32.totalorder %s1090_s21, 1  ;;  %p190_p8 = scmp.lt.s32.totalorder %s1090_s21, 3 }
   0xc   : > { %p191_p9 = pnand %p815_p7, %p190_p8 }
   0xd   : > { %p218_p10 = scmp.lt.s32.totalorder (!%p191_p9), %s1148_s22, 1  ;;  %v1003_v0 = vld [vmem:[%s1385_s1 + $0x40] sm:$0xff] (!%p191_p9)   ;;  %v1005_v2 = vld [vmem:[%s1385_s1 + $0x48] sm:$0xff] (!%p191_p9)   ;;  %vm310_vm0 = vcmask (!%p191_p9), 1043456   ;;  %vm238_vm1 = vcmask (!%p191_p9), 1046528   ;;  %v1007_v4 = vld [vmem:[%s1385_s1 + $0x50] sm:$0xff] (!%p191_p9)  }
   0xe   : > { %194 = sbr.rel (%p191_p9) target bundleno = 643 (0x283), region = 40  ;;  %v1004_v1 = vld [vmem:[%s1385_s1] sm:$0xff] (!%p191_p9)   ;;  %863 = vmatprep.subr.bf16.mxu0 (!%p191_p9), %v1003_v0  ;;  %v1006_v3 = vld [vmem:[%s1385_s1 + $0x8] sm:$0xff] (!%p191_p9)   ;;  %vm255_vm2 = vcmask (!%p191_p9), 1045504   ;;  %vm327_vm3 = vcmask (!%p191_p9), 1042432   ;;  %v1008_v12 = vld [vmem:[%s1385_s1 + $0x10] sm:$0xff] (!%p191_p9)  }
   0xf   : > { %864 = vmatpush3.bf16.msra.mxu0 (!%p191_p9), %v1004_v1  ;;  %vm272_vm4 = vcmask (!%p191_p9), 1041408   ;;  %v1009_v14 = vld [vmem:[%s1385_s1 + $0x58] sm:$0xff] (!%p191_p9)   ;;  %s1092_s8 = smov (!%p191_p9), 32   ;;  %v1011_v32 = vld [vmem:[%s1385_s1 + $0x60] sm:$0xff] (!%p191_p9)   ;;  %s1093_s13 = smov (!%p191_p9), 64   ;;  %v1013_v46 = vld [vmem:[%s1385_s1 + $0x68] sm:$0xff] (!%p191_p9)  }
  0x10   : > { %865 = vmatprep.subr.bf16.mxu0 (!%p191_p9), %v1005_v2  ;;  %v1010_v27 = vld [vmem:[%s1385_s1 + $0x18] sm:$0xff] (!%p191_p9)   ;;  %v1012_v41 = vld [vmem:[%s1385_s1 + $0x20] sm:$0xff] (!%p191_p9)   ;;  %s1094_s23 = smov (!%p191_p9), 96   ;;  %v1014_v59 = vld [vmem:[%s1385_s1 + $0x28] sm:$0xff] (!%p191_p9)   ;;  %vm349_vm5 = vcmask (!%p191_p9), 261120   ;;  %vm289_vm6 = vcmask (!%p191_p9), 1040384  }
  0x11   : > { %v1018_v60 = vld [vmem:[%s1385_s1 + $0x80] sm:$0xff] (!%p191_p9)   ;;  %v1015_v62 = vld [vmem:[%s1385_s1 + $0x70] sm:$0xff] (!%p191_p9)   ;;  %v1020_v63 = vld [vmem:[%s1385_s1 + $0x88] sm:$0xff] (!%p191_p9)   ;;  %vm353_vm7 = vcmask (!%p191_p9), 523264   ;;  %vm357_vm8 = vcmask (!%p191_p9), 785408   ;;  %vm664_vm11 = vcmask (!%p191_p9), 130048  }
  0x12   : > { %898 = vmatprep.subr.bf16.mxu1 (!%p191_p9), %v1018_v60  ;;  %s215_s6 = sand.u32 (!%p191_p9), 1, %s1082_s19   ;;  %vm732_vm13 = vcmask (!%p191_p9), 519168   ;;  %s914_s14 = smul.u32 (!%p191_p9), 192, %s1148_s22 }
  0x13   : > { %866 = vmatpush3.bf16.msra.mxu0 (!%p191_p9), %v1006_v3  ;;  %899 = vmatpush3.bf16.msra.mxu1 (!%p191_p9), %v1018_v60 }
  0x14   : > { %867 = vmatprep.subr.bf16.mxu0 (!%p191_p9), %v1007_v4  ;;  %900 = vmatprep.subr.bf16.mxu1 (!%p191_p9), %v1020_v63 }
  0x15   : > { %s219_s7 = scalar_select %p218_p10, %s1148_s22, 1 }
  0x17   : > { %s913_s10 = smul.u32 20, %s219_s7  ;;  %868 = vmatpush3.bf16.msra.mxu0 %v1008_v12  ;;  %901 = vmatpush3.bf16.msra.mxu1 %v1020_v63 }
  0x18   : > { %869 = vmatprep.subr.bf16.mxu0 %v1009_v14  ;;  %s912_s7 = smul.u32 12, %s215_s6 }
  0x19   : > { %s222_s17 = scalar_lea.vmem %s1384_s0, %s913_s10 }
  0x1a   : > { %v855_v5 = vld [vmem:[%s222_s17] sm:$0xff]   ;;  %v862_v6 = vld [vmem:[%s222_s17 + $0x8] sm:$0xff]   ;;  %v228_v7 = vld [vmem:[%s222_s17 + $0x10] sm:$0x7]  ;;  %s217_s11 = scalar_lea.vmem [#allocation2], %s912_s7  ;;  %s1341_s17 = scalar_lea.sflag [#allocation3], %s215_s6 }
  0x1b   : > { %v1195_v8 = vunpack.c.h.bf16 %v855_v5  ;;  %v1197_v9 = vunpack.c.l.bf16 %v862_v6  ;;  %v1199_v10 = vunpack.c.h.bf16 %v862_v6  ;;  %v1201_v11 = vunpack.c.l.bf16 %v855_v5  ;;  %870 = vmatpush3.bf16.msra.mxu0 %v1010_v27  ;;  %v1016_v5 = vld [vmem:[%s1385_s1 + $0x30] sm:$0xff]   ;;  %s750_s12 = sshll.u32 %s217_s11, 4  ;;  %s1334_s12 = int_to_ptr.vmem [resolvable:$true] %s750_s12 }
  0x1c   : > { %v1206_v13 = vunpack.c.l.bf16 %v228_v7  ;;  %871 = vmatprep.subr.bf16.mxu0 %v1011_v32  ;;  %v1017_v7 = vld [vmem:[%s1385_s1 + $0x78] sm:$0xff]   ;;  %s1028_s22 = scalar_lea.vmem %s1334_s12, 192 }
  0x1d   : > { %v958_v15 = vpack.i.bf16 %v1197_v9, %v1195_v8  ;;  %v311_v16 = vrot.slane %v1195_v8, 4  ;;  %v312_v17 = vrot.slane %v1197_v9, 4  ;;  %v314_v18 = vrot.slane %v1199_v10, 4  ;;  %p1029_p11 = scmp.ne.s32.totalorder %s1334_s12, %s1028_s22 }
  0x1e   : > { %v239_v19 = vrot.slane %v1201_v11, 1  ;;  %v240_v20 = vrot.slane %v1195_v8, 1  ;;  %v242_v21 = vrot.slane %v1197_v9, 1  ;;  %v256_v22 = vrot.slane %v1201_v11, 2 }
  0x1f   : > { %959 = vrot.lane.b32.xlu0 %v958_v15, %s1092_s8  ;;  %v313_v23 = vsel %vm310_vm0, %v311_v16, %v312_v17  ;;  %v315_v24 = vsel %vm310_vm0, %v312_v17, %v314_v18  ;;  %v257_v25 = vrot.slane %v1195_v8, 2  ;;  %v259_v26 = vrot.slane %v1197_v9, 2  ;;  %872 = vmatpush3.bf16.msra.mxu0 %v1012_v41  ;;  %p1030_p12 = pnand %p1029_p11, %p1165_p5 }
  0x20   : > { %v968_v28 = vpack.i.bf16 %v315_v24, %v313_v23  ;;  %v241_v29 = vsel %vm238_vm1, %v239_v19, %v240_v20  ;;  %v243_v30 = vsel %vm238_vm1, %v240_v20, %v242_v21  ;;  %v328_v31 = vrot.slane %v1195_v8, 5  ;;  %873 = vmatprep.subr.bf16.mxu0 %v1013_v46 }
  0x21   : > { %v963_v33 = vpack.i.bf16 %v243_v30, %v241_v29  ;;  %v258_v34 = vsel %vm255_vm2, %v256_v22, %v257_v25  ;;  %v260_v35 = vsel %vm255_vm2, %v257_v25, %v259_v26  ;;  %v329_v36 = vrot.slane %v1197_v9, 5  ;;  %p1031_p13 = pneg %p1030_p12 }
  0x22   : > { %969 = vrot.lane.b32.xlu1 %v968_v28, %s1093_s13  ;;  %v973_v37 = vpack.i.bf16 %v260_v35, %v258_v34  ;;  %v331_v38 = vrot.slane %v1199_v10, 5  ;;  %v273_v39 = vrot.slane %v1201_v11, 6  ;;  %v274_v40 = vrot.slane %v1195_v8, 6 }
  0x23   : > { %964 = vrot.lane.b32.xlu0 %v963_v33, %s1092_s8  ;;  %v330_v42 = vsel %vm327_vm3, %v328_v31, %v329_v36  ;;  %v276_v43 = vrot.slane %v1197_v9, 6  ;;  %v244_v44 = vrot.slane %v1199_v10, 1  ;;  %v261_v45 = vrot.slane %v1199_v10, 2  ;;  %874 = vmatpush3.bf16.msra.mxu0 %v1014_v59 }
  0x24   : > { %v332_v47 = vsel %vm327_vm3, %v329_v36, %v331_v38  ;;  %v275_v48 = vsel %vm272_vm4, %v273_v39, %v274_v40  ;;  %v316_v49 = vrot.slane %v1206_v13, 4  ;;  %v278_v50 = vrot.slane %v1199_v10, 6  ;;  %875 = vmatprep.subr.bf16.mxu0 %v1015_v62 }
  0x25   : > { %v978_v51 = vpack.i.bf16 %v332_v47, %v330_v42  ;;  %v277_v52 = vsel %vm272_vm4, %v274_v40, %v276_v43  ;;  %v245_v53 = vsel %vm238_vm1, %v242_v21, %v244_v44  ;;  %v262_v56 = vsel %vm255_vm2, %v259_v26, %v261_v45 }
  0x26   : > { %974 = vrot.lane.b32.xlu1 %v973_v37, %s1093_s13  ;;  %v983_v54 = vpack.i.bf16 %v277_v52, %v275_v48  ;;  %v988_v55 = vpack.i.bf16 %v245_v53, %v1199_v10  ;;  %v317_v57 = vsel %vm310_vm0, %v314_v18, %v316_v49  ;;  %v333_v58 = vrot.slane %v1206_v13, 5 }
  0x27   : > { %979 = vrot.lane.b32.xlu0 %v978_v51, %s1094_s23  ;;  %v279_v61 = vsel %vm272_vm4, %v276_v43, %v278_v50  ;;  %v344_v2 = vrot.slane %v1206_v13, 6  ;;  %v993_v3 = vpack.i.bf16 %v262_v56, %v317_v57  ;;  %876 = vmatpush3.bf16.msra.mxu0 %v1016_v5  ;;  %v1019_v13 = vld [vmem:[%s1385_s1 + $0x38] sm:$0xff]   ;;  %v293_v15 = vrot.slane %v1197_v9, 7 }
  0x28   : > { %v334_v0 = vsel %vm327_vm3, %v331_v38, %v333_v58  ;;  %v372_v1 = vpack.c.bf16 %v279_v61, %v277_v52  ;;  %877 = vmatprep.subr.bf16.mxu0 %v1017_v7  ;;  %v290_v16 = vrot.slane %v1201_v11, 7  ;;  %v291_v17 = vrot.slane %v1195_v8, 7 }
  0x29   : > { %v998_v4 = vpack.i.bf16 %v279_v61, %v334_v0  ;;  %v345_v6 = vsel %vm272_vm4, %v278_v50, %v344_v2  ;;  %v295_v32 = vrot.slane %v1199_v10, 7 }
  0x2a   : > { %984 = vrot.lane.b32.xlu1 %v983_v54, %s1094_s23  ;;  %902 = vmatprep.mubr.msk.bf16.mxu1 %vm349_vm5, %v372_v1  ;;  %v375_v12 = vpack.c.bf16 %v345_v6, %v345_v6  ;;  %v292_v22 = vsel %vm289_vm6, %v290_v16, %v291_v17  ;;  %v294_v23 = vsel %vm289_vm6, %v291_v17, %v293_v15  ;;  %v1021_v6 = vld [vmem:[%s1387_s3] sm:$0xff]  }
  0x2b   : > { %989 = vrot.lane.b32.xlu0 %v988_v55, %s1092_s8  ;;  %878 = vmatpush3.bf16.msra.mxu0 %v1019_v13  ;;  %v296_v45 = vsel %vm289_vm6, %v293_v15, %v295_v32  ;;  %v817_v13 = vld [vmem:[%s1386_s2] ss:$0 sm:$0xff]  ;;  %s1339_s8 = scalar_lea.hbm %s1389_s5, %s914_s14 }
  0x2c   : > { %903 = vmatmul.mubr.msk.bf16.vlgmr.msra.gmra.mrb[0].mxu1 %vm349_vm5, %v375_v12  ;;  %906 = vmatprep.subr.bf16.mxu1 %v1021_v6 }
  0x2d   : > { %907 = vmatpush3.bf16.msra.mxu1 %v1021_v6 }
  0x2e   : > { %994 = vrot.lane.b32.xlu1 %v993_v3, %s1093_s13 }
  0x2f   : > { %999 = vrot.lane.b32.xlu0 %v998_v4, %s1094_s23  ;;  %s1095_s23 = smov [#allocation2]  }
  0x30   : > { %s1032_s25 = sshll.u32 %s1095_s23, 4  ;;  %s1033_s25 = int_to_ptr.vmem [resolvable:$false] %s1032_s25 }
  0x31   : > { %s1034_s26 = scalar_lea.vmem %s1033_s25, 384  ;;  %p1035_p0 = scmp.lt.s32.totalorder %s1334_s12, %s1033_s25 }
  0x32   : > { %p1036_p1 = scmp.lt.s32.totalorder %s1034_s26, %s1028_s22 }
  0x34   : > { %p1037_p2 = por %p1036_p1, %p1035_p0 }
  0x36   : > { %p1038_p3 = pnand %p1037_p2, %p1031_p13 }
  0x91   : > { %v960_v14 = vpop.permute.xlu0 %959 }
  0x92   : > { %v962_v18 = vunpack.i.h.bf16 %v960_v14  ;;  %v961_v19 = vunpack.i.l.bf16 %v960_v14 }
  0x94   : > { %v970_v20 = vpop.permute.xlu1 %969  ;;  %v361_v29 = vsel %vm349_vm5, %v292_v22, %v961_v19  ;;  %v362_v30 = vsel %vm349_vm5, %v294_v23, %v962_v18 }
  0x95   : > { %v965_v21 = vpop.permute.xlu0 %964  ;;  %v972_v24 = vunpack.i.h.bf16 %v970_v20  ;;  %v971_v25 = vunpack.i.l.bf16 %v970_v20 }
  0x96   : > { %v967_v26 = vunpack.i.h.bf16 %v965_v21  ;;  %v966_v27 = vunpack.i.l.bf16 %v965_v21 }
  0x97   : > { %v364_v39 = vsel %vm353_vm7, %v361_v29, %v971_v25  ;;  %v365_v40 = vsel %vm353_vm7, %v362_v30, %v972_v24 }
  0x98   : > { %v975_v28 = vpop.permute.xlu1 %974  ;;  %v351_v37 = vsel %vm349_vm5, %v1195_v8, %v967_v26  ;;  %v350_v38 = vsel %vm349_vm5, %v1201_v11, %v966_v27 }
  0x99   : > { %v980_v31 = vpop.permute.xlu0 %979  ;;  %v977_v33 = vunpack.i.h.bf16 %v975_v28  ;;  %v976_v34 = vunpack.i.l.bf16 %v975_v28 }
  0x9a   : > { %v982_v35 = vunpack.i.h.bf16 %v980_v31  ;;  %v981_v36 = vunpack.i.l.bf16 %v980_v31 }
  0x9b   : > { %v354_v8 = vsel %vm353_vm7, %v350_v38, %v976_v34  ;;  %v355_v48 = vsel %vm353_vm7, %v351_v37, %v977_v33 }
  0x9c   : > { %v985_v41 = vpop.permute.xlu1 %984  ;;  %v367_v42 = vsel %vm357_vm8, %v364_v39, %v981_v36  ;;  %v368_v10 = vsel %vm357_vm8, %v365_v40, %v982_v35 }
  0x9d   : > { %v987_v43 = vunpack.i.h.bf16 %v985_v41  ;;  %v986_v44 = vunpack.i.l.bf16 %v985_v41  ;;  %v990_v46 = vpop.permute.xlu0 %989  ;;  %v371_v47 = vpack.c.bf16 %v368_v10, %v367_v42 }
  0x9e   : > { %v992_v11 = vunpack.i.h.bf16 %v990_v46  ;;  %v991_v49 = vunpack.i.l.bf16 %v990_v46 }
  0x9f   : > { %565 = vmatprep.mubr.bf16.mxu0 %v371_v47  ;;  %v358_v50 = vsel %vm357_vm8, %v354_v8, %v986_v44  ;;  %v359_v51 = vsel %vm357_vm8, %v355_v48, %v987_v43 }
  0xa0   : > { %v352_v52 = vsel %vm349_vm5, %v1197_v9, %v992_v11  ;;  %v363_v53 = vsel %vm349_vm5, %v296_v45, %v991_v49  ;;  %v995_v54 = vpop.permute.xlu1 %994  ;;  %v370_v55 = vpack.c.bf16 %v359_v51, %v358_v50  ;;  %v841_v45 = vld [vmem:[%s1388_s4] ss:$0 sm:$0xff] }
  0xa1   : > { %v997_v56 = vunpack.i.h.bf16 %v995_v54  ;;  %v996_v57 = vunpack.i.l.bf16 %v995_v54  ;;  %v1000_v58 = vpop.permute.xlu0 %999 }
  0xa2   : > { %v1002_v59 = vunpack.i.h.bf16 %v1000_v58  ;;  %v1001_v60 = vunpack.i.l.bf16 %v1000_v58  ;;  %566 = vmatmul.mubr.bf16.vlgmr.msra.gmra.mrb[0].mxu0 %v370_v55 }
  0xa3   : > { %v356_v61 = vsel %vm353_vm7, %v352_v52, %v997_v56  ;;  %v366_v62 = vsel %vm353_vm7, %v363_v53, %v996_v57 }
  0xa4   : > { %v369_v63 = vsel %vm357_vm8, %v366_v62, %v1001_v60  ;;  %v360_v1 = vsel %vm357_vm8, %v356_v61, %v1002_v59 }
  0xa5   : > { %v374_v0 = vpack.c.bf16 %v369_v63, %v369_v63  ;;  %v373_v9 = vpack.c.bf16 %v360_v1, %v360_v1 }
  0xa7   : > { %573 = vmatprep.mubr.bf16.mxu0 %v374_v0 }
  0xaa   : > { %574 = vmatmul.mubr.bf16.gmra.mrb[4].mxu0 %v373_v9 }
  0xff   : > { %v904_v2 = vpop.f32.mrb[0].mxu1 }
 0x100   : > { %v615_v3 = vpop.f32.mrb[1].mxu1 }
 0x101   : > { %v905_v4 = vpop.f32.mrb[2].mxu1 }
 0x102   : > { %v618_v5 = vpop.f32.mrb[3].mxu1 }
 0x175   : > { %v879_v7 = vpop.f32.mrb[0].mxu0 }
 0x176   : > { %v880_v12 = vpop.f32.mrb[1].mxu0 }
 0x177   : > { %v881_v14 = vadd.f32 %v880_v12, %v879_v7  ;;  %v882_v15 = vpop.f32.mrb[2].mxu0 }
 0x178   : > { %v883_v16 = vpop.f32.mrb[3].mxu0 }
 0x179   : > { %v884_v17 = vadd.f32 %v883_v16, %v882_v15  ;;  %v568_v18 = vadd.f32 %v881_v14, %v817_v13 }
 0x17b   : > { %v616_v19 = vadd.f32 %v615_v3, %v568_v18  ;;  %v571_v20 = vadd.f32 %v884_v17, %v817_v13 }
 0x17d   : > { %v632_v21 = vmin.f32 %v616_v19, 0.0  ;;  %v619_v22 = vadd.f32 %v618_v5, %v571_v20  ;;  %v885_v23 = vpop.f32.mrb[4].mxu0  ;;  %vm629_vm9 = vcmp.gt.f32.partialorder %v616_v19, 0.0 }
 0x17e   : > { %v886_v24 = vpop.f32.mrb[5].mxu0 }
 0x17f   : > { %v635_v25 = vmul.f32 1.442695, %v632_v21  ;;  %v633_v26 = vmin.f32 %v619_v22, 0.0  ;;  %v887_v27 = vadd.f32 %v886_v24, %v885_v23  ;;  %v888_v28 = vpop.f32.mrb[6].mxu0  ;;  %vm630_vm10 = vcmp.gt.f32.partialorder %v619_v22, 0.0 }
 0x180   : > { %v889_v29 = vpop.f32.mrb[7].mxu0 }
 0x181   : > { %1022 = vpow2.f32 %v635_v25  ;;  %v637_v30 = vmul.f32 1.442695, %v633_v26  ;;  %v576_v31 = vadd.f32 %v887_v27, %v817_v13 }
 0x183   : > { %1024 = vpow2.f32 %v637_v30  ;;  %v624_v32 = vadd.f32 %v904_v2, %v576_v31 }
 0x185   : > { %v634_v33 = vmin.f32 %v624_v32, 0.0  ;;  %vm631_vm12 = vcmp.gt.f32.partialorder %v624_v32, 0.0 }
 0x187   : > { %v639_v34 = vmul.f32 1.442695, %v634_v33 }
 0x189   : > { %1026 = vpow2.f32 %v639_v34 }
 0x18b   : > { %v1023_v35 = vpop.eup %1022 }
 0x18c   : > { %v838_v36 = vadd.f32 -1.0, %v1023_v35 }
 0x18d   : > { %v1025_v37 = vpop.eup %1024 }
 0x18e   : > { %v839_v38 = vadd.f32 -1.0, %v1025_v37  ;;  %v644_v39 = vsel %vm629_vm9, %v616_v19, %v838_v36 }
 0x190   : > { %v645_v40 = vsel %vm630_vm10, %v619_v22, %v839_v38 }
 0x191   : > { %v647_v41 = vpack.c.bf16 %v645_v40, %v644_v39 }
 0x193   : > { %v1027_v42 = vpop.eup %1026  ;;  %908 = vmatprep.mubr.msk.bf16.mxu1 %vm664_vm11, %v647_v41 }
 0x194   : > { %v840_v10 = vadd.f32 -1.0, %v1027_v42 }
 0x196   : > { %v646_v43 = vsel %vm631_vm12, %v624_v32, %v840_v10 }
 0x197   : > { %v648_v44 = vpack.c.bf16 %v646_v43, %v646_v43 }
 0x199   : > { %909 = vmatmul.mubr.msk.bf16.vlgmr.msra.gmra.mrb[4].mxu1 %vm664_vm11, %v648_v44 }
 0x26c   : > { %v910_v46 = vpop.f32.mrb[4].mxu1 }
 0x26d   : > { %v714_v47 = vadd.f32 %v910_v46, %v841_v45  ;;  %v705_v8 = vpop.f32.mrb[5].mxu1 }
 0x26e   : > { %v706_v48 = vadd.f32 %v841_v45, %v705_v8  ;;  %v911_v11 = vpop.f32.mrb[6].mxu1 }
 0x26f   : > { %v853_v49 = vpack.c.bf16 %v714_v47, %v714_v47  ;;  %v708_v50 = vpop.f32.mrb[7].mxu1 }
 0x270   : > { %v851_v51 = vpack.c.bf16 %v706_v48, %v706_v48  ;;  %v709_v52 = vadd.f32 %v841_v45, %v708_v50 }
 0x271   : > { %735 = vst.msk [vmem:[%s217_s11 + $0x8] sm:$0xf] %vm732_vm13, %v853_v49 }
 0x272   : > { %733 = vst.msk [vmem:[%s217_s11] sm:$0xf] %vm732_vm13, %v851_v51  ;;  %v852_v53 = vpack.c.bf16 %v709_v52, %v709_v52 }
 0x274   : > { %734 = vst.msk [vmem:[%s217_s11 + $0x4] sm:$0xf] %vm732_vm13, %v852_v53 }
 0x275   : > { %1041 = shalt.err (!%p1038_p3)
}
 0x276   : > { %s1042_s30 = scalar_lea.hbm %s1339_s8, 192  ;;  %s1046_s9 = scalar_lea.hbm %s1389_s5, 384 }
 0x277   : > { %p1043_p4 = scmp.ne.s32.totalorder %s1339_s8, %s1042_s30  ;;  %p1047_p9 = scmp.lt.u32.totalorder %s1339_s8, %s1389_s5 }
 0x278   : > { %p1048_p10 = scmp.lt.u32.totalorder %s1046_s9, %s1042_s30  ;;  %p1050_p12 = scmp.lt.u32.totalorder %s1042_s30, %s1339_s8 }
 0x279   : > { %p1044_p7 = pnand %p1043_p4, %p1165_p5 }
 0x27a   : > { %p1049_p11 = por %p1048_p10, %p1047_p9 }
 0x27b   : > { %p1045_p8 = pneg %p1044_p7 }
 0x27c   : > { %p1051_p13 = por %p1050_p12, %p1049_p11 }
 0x27e   : > { %p1052_p0 = pnand %p1051_p13, %p1045_p8 }
 0x280   : > { %1055 = shalt.err (!%p1052_p0)
}
 0x281   : > { %s1096_s14 = smov 4  }
 0x282   : > { %915 = dma.vmem_to_hbm [thread:$0]  (%p1165_p5), %s1334_s12, 192, %s1339_s8, %s1341_s17, %s1093_s13, %s1093_s13, %s1096_s14  }
 0x283 PF: > { %p921_p1 = scmp.ge.s32.totalorder %s1090_s21, 2  ;;  %s765_s15 = sand.u32 1, %s1078_s18  }
 0x284   : > { %s766_s16 = scalar_lea.sflag [#allocation3], %s765_s15 }
 0x285   : > { %p918_p2 = pnand %p921_p1, %p1169_p6 }
 0x287   : > { %1073 = dma.done.wait (!%p918_p2), %s766_s16, 192  }
 0x288   : > { %1075 = vsyncadd (!%p918_p2), %s766_s16, 4294967104  ;;  %p15_p3 = scmp.ge.s32.totalorder %s1152_s24, 4   ;;  %s1392_s18 = smov %s1082_s19 }
 0x289   : > { %s1393_s19 = smov %s1086_s20  ;;  %s1394_s20 = smov %s1163_s27 }
 0x28a   : > { %s1395_s21 = smov %s1152_s24  ;;  %17 = sbr.rel (!%p15_p3) target bundleno = 3 (0x3), region = 75 }
 0x291   :  { %771 = vsyncpa [#allocation3], 1 }
 0x292   :  { %773 = vsyncpa [#allocation3 + $0x1], 1 }

</bundles_post_ra>
